<compile_context>
chip_gen: v7x
topology: tpu7x:2x2x1
jax: 0.10.0
libtpu: 0.0.40
codegen_flags: <defaults>
</compile_context>

<pallas_src>
import functools
import math

import jax
import jax.numpy as jnp
from jax import lax
from jax.experimental import pallas as pl
from jax.experimental.pallas import tpu as pltpu

S = 64.0          # logit scale
M = 0.5           # additive angular margin
EPS = 1e-4

_COS_M = math.cos(M)
_SIN_M = math.sin(M)
# theta + M exceeds the upper clip (pi - EPS) iff cosine < cos(pi - M - EPS).
_THRESH = math.cos(math.pi - M - EPS)
_CLIP_VAL = math.cos(math.pi - EPS)   # cos of the upper-clipped angle


def arcface_kernel(*refs, in_kernel_norm):
    # refs: emb (B, E) | weight tile (E, TN) | [inv_norm tile (1, TN) f32]
    #       | labels (B, 1) i32 | out (B, TN)
    if in_kernel_norm:
        emb_ref, w_ref, label_ref, out_ref = refs
    else:
        emb_ref, w_ref, inv_ref, label_ref, out_ref = refs

    j = pl.program_id(0)
    tn = out_ref.shape[1]
    w = w_ref[...]

    if in_kernel_norm:
        if w.dtype == jnp.float32:
            # Exact f32 path (parity/debug): VPU square + sublane reduce.
            sq = jnp.sum(w * w, axis=0, keepdims=True)            # (1, tn)
        else:
            # bf16 path: push the column sum-of-squares onto the MXU via a
            # ones block (8 rows to stay sublane aligned) -- no f32 (E, tn)
            # temporary and no full-tile f32 cast.
            ones = jnp.ones((8, w.shape[0]), dtype=w.dtype)
            sq = jnp.dot(ones, w * w,
                         preferred_element_type=jnp.float32)[0:1, :]
        col_scale = lax.rsqrt(sq + 1e-12) * S      # 1/||w_col|| with S folded
    else:
        col_scale = inv_ref[...] * S               # precomputed 1/||w_col||

    # s * cosine for the whole tile: MXU matmul (f32 accumulate) + one scale
    # mul.  S = 64 is a power of two, so scaling commutes exactly with the
    # clip (bounds scaled accordingly).
    scaled = jnp.dot(emb_ref[...], w,
                     preferred_element_type=jnp.float32) * col_scale
    scaled = jnp.clip(scaled, (-1.0 + EPS) * S, (1.0 - EPS) * S)

    # Label-column mask for this class tile.
    local_label = label_ref[...] - j * tn                          # (B, 1)
    col_ids = lax.broadcasted_iota(jnp.int32, scaled.shape, 1)     # (B, tn)
    is_label = col_ids == local_label

    # Per-row label-column cosine via a masked lane reduce (XLU), then the
    # margin math runs on the (B, 1) column only.  Rows whose label lives in
    # a different tile produce a dummy value that is never selected below.
    lab_cos = jnp.sum(jnp.where(is_label, scaled, 0.0), axis=1,
                      keepdims=True) * (1.0 / S)                   # (B, 1)
    # cos(arccos(c) + M) via the addition identity: the lower clip of
    # theta + M at EPS never binds (theta + M >= M > EPS); the upper clip at
    # pi - EPS binds iff cosine < cos(pi - M - EPS).
    sin_t = jnp.sqrt(jnp.maximum(1.0 - lab_cos * lab_cos, 0.0))
    lab_margin = (lab_cos * _COS_M - sin_t * _SIN_M) * S
    lab_margin = jnp.where(lab_cos < _THRESH, _CLIP_VAL * S, lab_margin)

    # Non-label columns: cos(clip(arccos(c))) == c exactly (cosine pre-clipped).
    out_ref[...] = jnp.where(is_label, lab_margin, scaled).astype(out_ref.dtype)


def _round_up(x, m):
    return -(-x // m) * m


def _vmem_budget_bytes():
    # ~72% of the physical per-core VMEM: ~92 MiB on v5e/v6e (128 MiB parts),
    # ~46 MiB on v7x (64 MiB per TensorCore).  Conservative v7x-sized fallback
    # if the query is unavailable.
    try:
        cap = int(pltpu.get_tpu_info().vmem_capacity_bytes)
    except Exception:
        cap = 64 << 20
    return max(32 << 20, min(int(cap * 0.72), 100 << 20))


def arcface_forward(embeddings, norms, label, kernel, *, tn=None,
                    compute_dtype=jnp.bfloat16, out_dtype=jnp.float32,
                    inv_norm=None):
    """ArcFace forward.  Grid tiles (parallel) over the class dimension.

    inv_norm: optional precomputed f32 reciprocal column norms of `kernel`
      (shape (C,) or (1, C)).  Pass it in the large-batch / training regime
      (the backward needs the norms anyway); otherwise the column norm is
      computed in-kernel.  out_dtype=bf16 halves the (B, C) writeback stream
      when the downstream loss tolerates ~0.25 logit quantization.
    """
    del norms  # unused by the reference forward pass
    B, E = embeddings.shape
    E2, C = kernel.shape
    assert E == E2

    cd = jnp.dtype(compute_dtype).itemsize
    ob = jnp.dtype(out_dtype).itemsize
    budget = _vmem_budget_bytes()

    # --- class-tile size derived from the per-generation VMEM budget --------
    c_cols = _round_up(C, 128)
    resident = B * E * cd + B * 4            # embeddings + labels (resident)

    def fits(t, w_bufs):
        per_step = w_bufs * E * t * cd + 2 * B * t * ob + 2 * t * 4
        return resident + per_step <= budget

    tn_req = 2048 if tn is None else tn
    tn = max(128, min(_round_up(tn_req, 128), c_cols))
    while tn > 128 and not fits(tn, 2):
        tn -= 128
    # TODO(synk): chunk the batch dimension as well if the resident embeddings
    # plus a single 128-wide class tile still exceed the budget at extreme B*E.

    def steps_for(t):
        return -(-C // t)

    n_steps = steps_for(tn)
    if n_steps > 1 and n_steps % 2:
        # Keep both v7x TensorCores busy on the last wave: shrink the tile so
        # the step count is even (same total columns, no extra padded tile).
        tn_even = _round_up(-(-c_cols // (n_steps + 1)), 128)
        if steps_for(tn_even) % 2 == 0 and fits(tn_even, 2):
            tn = tn_even
            n_steps = steps_for(tn)
    c_pad = tn * n_steps

    if inv_norm is not None:
        inv_norm = jnp.asarray(inv_norm, jnp.float32).reshape(1, C)
    if c_pad != C:
        # Zero padding columns are harmless (zero logits) and sliced off below.
        kernel = jnp.pad(kernel, ((0, 0), (0, c_pad - C)))
        if inv_norm is not None:
            inv_norm = jnp.pad(inv_norm, ((0, 0), (0, c_pad - C)))

    emb = embeddings.astype(compute_dtype)
    ker = kernel.astype(compute_dtype)
    label2d = label.reshape(B, 1).astype(jnp.int32)

    # Third weight buffer hides DMA jitter from the bursty output writeback
    # when the VMEM budget allows (skipped on tight v7x configs / short grids).
    w_spec_kwargs = {}
    if n_steps > 2 and fits(tn, 3):
        w_spec_kwargs["pipeline_mode"] = pl.Buffered(3)
    w_spec = pl.BlockSpec((E, tn), lambda j: (0, j), **w_spec_kwargs)

    in_specs = [pl.BlockSpec((B, E), lambda j: (0, 0)), w_spec]
    operands = [emb, ker]
    if inv_norm is not None:
        in_specs.append(pl.BlockSpec((1, tn), lambda j: (0, j)))
        operands.append(inv_norm)
    in_specs.append(pl.BlockSpec((B, 1), lambda j: (0, 0)))
    operands.append(label2d)

    cost = pl.CostEstimate(
        flops=int(2 * B * E * c_pad + 6 * B * c_pad
                  + (2 * E * c_pad if inv_norm is None else 0)),
        transcendentals=int((c_pad if inv_norm is None else 0) + B * n_steps),
        bytes_accessed=int(E * c_pad * cd + B * c_pad * ob + B * E * cd + B * 4
                           + (c_pad * 4 if inv_norm is not None else 0)),
    )

    out = pl.pallas_call(
        functools.partial(arcface_kernel, in_kernel_norm=(inv_norm is None)),
        out_shape=jax.ShapeDtypeStruct((B, c_pad), out_dtype),
        grid=(n_steps,),
        in_specs=in_specs,
        out_specs=pl.BlockSpec((B, tn), lambda j: (0, j)),
        compiler_params=pltpu.CompilerParams(
            dimension_semantics=("parallel",),   # class tiles split across TCs
            vmem_limit_bytes=int(budget)),
        cost_estimate=cost,
    )(*operands)
    return out[:, :C] if c_pad != C else out


def _reference(embeddings, label, kernel):
    # Pure-JAX transcription of the PyTorch forward, for a sanity check.
    kn = kernel / jnp.linalg.norm(kernel, axis=0, keepdims=True)
    cosine = jnp.clip(embeddings @ kn, -1.0 + EPS, 1.0 - EPS)
    m_hot = jax.nn.one_hot(label, kernel.shape[1], dtype=jnp.float32) * M
    theta_m = jnp.clip(jnp.arccos(cosine) + m_hot, EPS, math.pi - EPS)
    return jnp.cos(theta_m) * S


if __name__ == "__main__":
    # Small shapes consistent with the module: batch=8, embedding=32, classes=256.
    B, E, C = 8, 32, 256
    key = jax.random.PRNGKey(0)
    k_emb, k_w, k_lbl = jax.random.split(key, 3)

    # Parameter init mimicking uniform_(-1, 1).renorm_(...): ~unit-norm columns
    # (the forward re-normalizes them anyway).
    kernel = jax.random.uniform(k_w, (E, C), jnp.float32, -1.0, 1.0)
    kernel = kernel / jnp.linalg.norm(kernel, axis=0, keepdims=True)

    emb_raw = jax.random.normal(k_emb, (B, E), jnp.float32)
    norms = jnp.linalg.norm(emb_raw, axis=1, keepdims=True)
    embeddings = emb_raw / norms                       # unit-norm embeddings
    label = jax.random.randint(k_lbl, (B,), 0, C, jnp.int32)

    ref = _reference(embeddings, label, kernel)

    # 1) f32 compute, f32 out, in-kernel column norm: tight parity w/ PyTorch.
    out_f32 = arcface_forward(embeddings, norms, label, kernel,
                              compute_dtype=jnp.float32)
    out_f32 = jax.block_until_ready(out_f32)
    assert out_f32.shape == (B, C)
    assert jnp.allclose(out_f32, ref, atol=1e-3, rtol=1e-3), "f32 mismatch"

    # 2) bf16 compute, in-kernel (MXU) column norm, f32 out (default path).
    out_bf16 = arcface_forward(embeddings, norms, label, kernel)
    out_bf16 = jax.block_until_ready(out_bf16)
    assert out_bf16.shape == (B, C)
    assert jnp.allclose(out_bf16, ref, atol=0.5, rtol=2e-2), "bf16 mismatch"

    # 3) bf16 compute, precomputed inv_norm, bf16 writeback (training regime).
    inv_norm = 1.0 / jnp.linalg.norm(kernel, axis=0)
    out_bf16_pre = arcface_forward(embeddings, norms, label, kernel,
                                   compute_dtype=jnp.bfloat16,
                                   out_dtype=jnp.bfloat16, inv_norm=inv_norm)
    out_bf16_pre = jax.block_until_ready(out_bf16_pre)
    assert out_bf16_pre.shape == (B, C)
    assert jnp.allclose(out_bf16_pre.astype(jnp.float32), ref,
                        atol=0.5, rtol=2e-2), "bf16 precomputed-norm mismatch"

    print("KERNEL_OK")
</pallas_src>

<mosaic_0001>
module attributes {stable_mosaic.version = 11 : i64} {
  func.func @arcface_kernel(%arg0: i32, %arg1: memref<8x32xf32, #tpu.memory_space<vmem>>, %arg2: memref<32x256xf32, #tpu.memory_space<vmem>>, %arg3: memref<8x1xi32, #tpu.memory_space<vmem>>, %arg4: memref<8x256xf32, #tpu.memory_space<vmem>>) attributes {dimension_semantics = [#tpu.dimension_semantics<parallel>], iteration_bounds = array<i64: 1>, scalar_prefetch = 0 : i64, scratch_operands = 0 : i64, tpu.core_type = #tpu.core_type<tc>, window_params = [{pipeline_mode = #tpu.pipeline_mode<synchronous>, transform_indices = @transform_0, window_bounds = array<i64: 8, 32>}, {transform_indices = @transform_1, window_bounds = array<i64: 32, 256>}, {pipeline_mode = #tpu.pipeline_mode<synchronous>, transform_indices = @transform_2, window_bounds = array<i64: 8, 1>}, {transform_indices = @transform_3, window_bounds = array<i64: 8, 256>}]} {
    %c0 = arith.constant 0 : index
    %c0_0 = arith.constant 0 : index
    %0 = vector.load %arg2[%c0, %c0_0] : memref<32x256xf32, #tpu.memory_space<vmem>>, vector<32x256xf32>
    %1 = arith.mulf %0, %0 : vector<32x256xf32>
    %cst = arith.constant dense<0.000000e+00> : vector<256xf32>
    %2 = vector.multi_reduction <add>, %1, %cst [0] : vector<32x256xf32> to vector<256xf32>
    %3 = vector.shape_cast %2 : vector<256xf32> to vector<1x256xf32>
    %cst_1 = arith.constant 9.99999996E-13 : f32
    %4 = vector.broadcast %cst_1 : f32 to vector<1x256xf32>
    %5 = arith.addf %3, %4 : vector<1x256xf32>
    %6 = math.rsqrt %5 : vector<1x256xf32>
    %cst_2 = arith.constant 6.400000e+01 : f32
    %7 = vector.broadcast %cst_2 : f32 to vector<1x256xf32>
    %8 = arith.mulf %6, %7 : vector<1x256xf32>
    %c0_3 = arith.constant 0 : index
    %c0_4 = arith.constant 0 : index
    %9 = vector.load %arg1[%c0_3, %c0_4] : memref<8x32xf32, #tpu.memory_space<vmem>>, vector<8x32xf32>
    %cst_5 = arith.constant dense<0.000000e+00> : vector<8x256xf32>
    %10 = tpu.matmul %9, %0, %cst_5 {dimension_numbers = #tpu.dot_dimension_numbers<[1], [0], [0], [1], [0, 0, 1, 1], [], []>} : vector<8x32xf32>, vector<32x256xf32>, vector<8x256xf32> -> vector<8x256xf32>
    %11 = vector.broadcast %8 : vector<1x256xf32> to vector<8x256xf32>
    %12 = arith.mulf %10, %11 : vector<8x256xf32>
    %cst_6 = arith.constant -6.399360e+01 : f32
    %cst_7 = arith.constant 6.399360e+01 : f32
    %13 = vector.broadcast %cst_6 : f32 to vector<8x256xf32>
    %14 = arith.maximumf %13, %12 : vector<8x256xf32>
    %15 = vector.broadcast %cst_7 : f32 to vector<8x256xf32>
    %16 = arith.minimumf %15, %14 : vector<8x256xf32>
    %c0_8 = arith.constant 0 : index
    %c0_9 = arith.constant 0 : index
    %17 = vector.load %arg3[%c0_8, %c0_9] : memref<8x1xi32, #tpu.memory_space<vmem>>, vector<8x1xi32>
    %c256_i32 = arith.constant 256 : i32
    %18 = arith.muli %arg0, %c256_i32 : i32
    %19 = vector.broadcast %18 : i32 to vector<8x1xi32>
    %20 = arith.subi %17, %19 : vector<8x1xi32>
    %21 = tpu.iota {dimensions = array<i32: 1>} : vector<8x256xi32>
    %22 = vector.broadcast %20 : vector<8x1xi32> to vector<8x256xi32>
    %23 = arith.cmpi eq, %21, %22 : vector<8x256xi32>
    %cst_10 = arith.constant 0.000000e+00 : f32
    %24 = vector.broadcast %cst_10 : f32 to vector<8x256xf32>
    %25 = arith.select %23, %16, %24 : vector<8x256xi1>, vector<8x256xf32>
    %cst_11 = arith.constant dense<0.000000e+00> : vector<8xf32>
    %26 = vector.multi_reduction <add>, %25, %cst_11 [1] : vector<8x256xf32> to vector<8xf32>
    %27 = vector.shape_cast %26 : vector<8xf32> to vector<8x1xf32>
    %cst_12 = arith.constant 1.562500e-02 : f32
    %28 = vector.broadcast %cst_12 : f32 to vector<8x1xf32>
    %29 = arith.mulf %27, %28 : vector<8x1xf32>
    %30 = arith.mulf %29, %29 : vector<8x1xf32>
    %cst_13 = arith.constant 1.000000e+00 : f32
    %31 = vector.broadcast %cst_13 : f32 to vector<8x1xf32>
    %32 = arith.subf %31, %30 : vector<8x1xf32>
    %cst_14 = arith.constant 0.000000e+00 : f32
    %33 = vector.broadcast %cst_14 : f32 to vector<8x1xf32>
    %34 = arith.maximumf %32, %33 : vector<8x1xf32>
    %35 = math.sqrt %34 : vector<8x1xf32>
    %cst_15 = arith.constant 0.87758255 : f32
    %36 = vector.broadcast %cst_15 : f32 to vector<8x1xf32>
    %37 = arith.mulf %29, %36 : vector<8x1xf32>
    %cst_16 = arith.constant 0.47942555 : f32
    %38 = vector.broadcast %cst_16 : f32 to vector<8x1xf32>
    %39 = arith.mulf %35, %38 : vector<8x1xf32>
    %40 = arith.subf %37, %39 : vector<8x1xf32>
    %cst_17 = arith.constant 6.400000e+01 : f32
    %41 = vector.broadcast %cst_17 : f32 to vector<8x1xf32>
    %42 = arith.mulf %40, %41 : vector<8x1xf32>
    %cst_18 = arith.constant -0.877534628 : f32
    %43 = vector.broadcast %cst_18 : f32 to vector<8x1xf32>
    %44 = arith.cmpf olt, %29, %43 : vector<8x1xf32>
    %cst_19 = arith.constant -6.400000e+01 : f32
    %45 = vector.broadcast %cst_19 : f32 to vector<8x1xf32>
    %46 = arith.select %44, %45, %42 : vector<8x1xi1>, vector<8x1xf32>
    %47 = vector.shape_cast %46 : vector<8x1xf32> to vector<8x1xf32>
    %48 = vector.broadcast %47 : vector<8x1xf32> to vector<8x256xf32>
    %49 = arith.select %23, %48, %16 : vector<8x256xi1>, vector<8x256xf32>
    %c0_20 = arith.constant 0 : index
    %c0_21 = arith.constant 0 : index
    %50 = vector.load %arg4[%c0_20, %c0_21] : memref<8x256xf32, #tpu.memory_space<vmem>>, vector<8x256xf32>
    tpu.vector_store %arg4[%c0_20, %c0_21], %49 {strides = array<i32>} : memref<8x256xf32, #tpu.memory_space<vmem>>, vector<8x256xf32>,
    return
  }
  func.func @transform_0(%arg0: i32) -> (i32, i32) {
    %c0_i32 = arith.constant 0 : i32
    %c0_i32_0 = arith.constant 0 : i32
    %c0_i32_1 = arith.constant 0 : i32
    return %c0_i32, %c0_i32_0 : i32, i32
  }
  func.func @transform_1(%arg0: i32) -> (i32, i32) {
    %c0_i32 = arith.constant 0 : i32
    %c0_i32_0 = arith.constant 0 : i32
    return %c0_i32, %arg0 : i32, i32
  }
  func.func @transform_2(%arg0: i32) -> (i32, i32) {
    %c0_i32 = arith.constant 0 : i32
    %c0_i32_0 = arith.constant 0 : i32
    %c0_i32_1 = arith.constant 0 : i32
    return %c0_i32, %c0_i32_0 : i32, i32
  }
  func.func @transform_3(%arg0: i32) -> (i32, i32) {
    %c0_i32 = arith.constant 0 : i32
    %c0_i32_0 = arith.constant 0 : i32
    return %c0_i32, %arg0 : i32, i32
  }
}

</mosaic_0001>

<bundles_post_ra>
// kernel: tpu_custom_call.1
= control target key start
LH: loop header
LB: loop body
LE: loop exit
PB: predicated region body
PF: predicated region fallthrough
CT: control target
= control target key end

     0   :  { %8 = vsyncpa [#allocation3], 0  ;;  %s336_s0 = inlined_call_operand.vmem [shape: f32[8,32], index: 0, kind: input, shape index: {}]   ;;  %s337_s1 = inlined_call_operand.hbm [shape: f32[32,256], index: 1, kind: input, shape index: {}]   ;;  %s338_s2 = inlined_call_operand.vmem [shape: s32[8,1], index: 2, kind: input, shape index: {}]   ;;  %s339_s3 = inlined_call_operand.hbm [shape: f32[8,256], index: 3, kind: output, shape index: {}]  }
   0x1   :  { %9 = vsyncpa [#allocation4], 0  ;;  %s276_s12 = smov [#allocation2]   ;;  %s228_s16 = scalar_lea.hbm %s337_s1, 1024 }
   0x2   :  { %s17_s13 = sshll.u32 %s276_s12, 4  ;;  %p229_p0 = scmp.ne.s32.totalorder %s337_s1, %s228_s16  ;;  %s18_s13 = int_to_ptr.vmem [resolvable:$true] %s17_s13 }
   0x3   :  { %p232_p1 = scmp.lt.u32.totalorder %s228_s16, %s337_s1 }
   0x5   :  { %p234_p2 = pnand %p232_p1, %p229_p0 }
   0x7   :  { %237 = shalt.err (!%p234_p2)
}
   0x8   :  { %s238_s21 = scalar_lea.vmem %s18_s13, 1024  ;;  %p243_p4 = scmp.lt.s32.totalorder %s18_s13, %s18_s13 }
   0x9   :  { %p239_p3 = scmp.ne.s32.totalorder %s18_s13, %s238_s21  ;;  %p244_p5 = scmp.lt.s32.totalorder %s238_s21, %s238_s21 }
   0xb   :  { %p245_p6 = por %p244_p5, %p243_p4 }
   0xd   :  { %p246_p7 = pnand %p245_p6, %p239_p3 }
   0xf   :  { %249 = shalt.err (!%p246_p7)
}
  0x10   :  { %s277_s22 = smov 256   ;;  %s278_s23 = smov 16  }
  0x11   :  { %23 = dma.hbm_to_vmem [thread:$0]  %s337_s1, 1024, %s18_s13, [#allocation3], %s277_s22, %s277_s22, %s278_s23  }
  0x12   :  { %272 = dma.done.wait [#allocation3], 1024  }
  0x13   :  { %273 = vsyncadd [#allocation3], 4294966272  ;;  %v279_v0 = vmov 0.0   ;;  %v280_v1 = vmov 0   ;;  %v30_v2 = vld [vmem:[#allocation2 + $0x8] sm:$0xff]  ;;  %v32_v3 = vld [vmem:[#allocation2 + $0x18] sm:$0xff]  ;;  %v155_v44 = vlaneseq }
  0x14   :  { %138 = vmatprep.mubr.f32.mxu0 %v279_v0  ;;  %221 = vset.pattern.permute.xlu0 %v280_v1  ;;  %v29_v4 = vld [vmem:[#allocation2] sm:$0xff]  ;;  %v38_v5 = vmul.f32 %v30_v2, %v30_v2  ;;  %v40_v6 = vmul.f32 %v32_v3, %v32_v3  ;;  %v207_v7 = vpack.c.bf16 %v32_v3, %v30_v2  ;;  %v31_v8 = vld [vmem:[#allocation2 + $0x10] sm:$0xff]  ;;  %v34_v10 = vld [vmem:[#allocation2 + $0x28] sm:$0xff]  ;;  %vm70_vm0 = vcmask 261120  }
  0x15   :  { %v37_v9 = vmul.f32 %v29_v4, %v29_v4  ;;  %v36_v11 = vld [vmem:[#allocation2 + $0x38] sm:$0xff]  ;;  %v39_v12 = vmul.f32 %v31_v8, %v31_v8  ;;  %v209_v13 = vpack.c.bf16 %v31_v8, %v29_v4  ;;  %v42_v14 = vmul.f32 %v34_v10, %v34_v10  ;;  %v33_v15 = vld [vmem:[#allocation2 + $0x20] sm:$0xff]  ;;  %v35_v16 = vld [vmem:[#allocation2 + $0x30] sm:$0xff] }
  0x16   :  { %v54_v17 = vadd.f32 %v40_v6, %v38_v5  ;;  %208 = vmatprep.subr.bf16.mxu0 %v207_v7  ;;  %v44_v18 = vmul.f32 %v36_v11, %v36_v11  ;;  %v211_v19 = vpack.c.bf16 %v36_v11, %v34_v10  ;;  %v41_v20 = vmul.f32 %v33_v15, %v33_v15  ;;  %v151_v21 = vld [vmem:[%s338_s2] sm:$0xff] }
  0x17   :  { %v45_v22 = vadd.f32 %v39_v12, %v37_v9  ;;  %210 = vmatpush1.bf16.msra.mxu0 %v209_v13  ;;  %v43_v23 = vmul.f32 %v35_v16, %v35_v16  ;;  %v213_v24 = vpack.c.bf16 %v35_v16, %v33_v15  ;;  %159 = vperm.xlu0 %221, %v151_v21   ;;  %v69_v29 = vld [vmem:[%s336_s0] sm:$0xff]  ;;  %v156_v47 = vand.u32 127, %v155_v44  ;;  %s281_s0 = smov [#allocation5]  }
  0x18   :  { %v55_v25 = vadd.f32 %v54_v17, %v42_v14  ;;  %212 = vmatprep.subr.bf16.mxu0 %v211_v19  ;;  %s195_s2 = sshll.u32 %s281_s0, 4  ;;  %s196_s2 = int_to_ptr.vmem [resolvable:$true] %s195_s2 }
  0x19   :  { %v46_v26 = vadd.f32 %v45_v22, %v41_v20  ;;  %v157_v50 = vadd.s32 128, %v156_v47  ;;  %s250_s29 = scalar_lea.vmem %s196_s2, 256  ;;  %p255_p9 = scmp.lt.s32.totalorder %s196_s2, %s196_s2 }
  0x1a   :  { %v56_v27 = vadd.f32 %v55_v25, %v44_v18  ;;  %p251_p8 = scmp.ne.s32.totalorder %s196_s2, %s250_s29  ;;  %p256_p10 = scmp.lt.s32.totalorder %s250_s29, %s250_s29 }
  0x1b   :  { %v47_v28 = vadd.f32 %v46_v26, %v43_v23  ;;  %214 = vmatpush1.bf16.msra.mxu0 %v213_v24 }
  0x1c   :  { %v57_v31 = vrot.slane %v56_v27, 4  ;;  %p257_p11 = por %p256_p10, %p255_p9 }
  0x1d   :  { %v48_v30 = vrot.slane %v47_v28, 4 }
  0x1e   :  { %204 = vmatmul.mubr.msk.f32.vlgmr.msra.gmra.mrb[0].mxu0 %vm70_vm0, %v69_v29  ;;  %v58_v33 = vadd.f32 %v57_v31, %v56_v27  ;;  %p258_p12 = pnand %p257_p11, %p251_p8 }
  0x1f   :  { %v49_v32 = vadd.f32 %v48_v30, %v47_v28 }
  0x20   :  { %v59_v35 = vrot.slane %v58_v33, 2 }
  0x21   :  { %v50_v34 = vrot.slane %v49_v32, 2 }
  0x22   :  { %v60_v37 = vadd.f32 %v59_v35, %v58_v33 }
  0x23   :  { %v51_v36 = vadd.f32 %v50_v34, %v49_v32 }
  0x24   :  { %v61_v39 = vrot.slane %v60_v37, 1 }
  0x25   :  { %v52_v38 = vrot.slane %v51_v36, 1 }
  0x26   :  { %v62_v41 = vadd.f32 %v61_v39, %v60_v37 }
  0x27   :  { %v53_v40 = vadd.f32 %v52_v38, %v51_v36 }
  0x28   :  { %v64_v43 = vadd.f32 1e-12, %v62_v41 }
  0x29   :  { %v63_v42 = vadd.f32 1e-12, %v53_v40 }
  0x2b   :  { %222 = vrsqrt.f32 %v63_v42 }
  0x2c   :  { %224 = vrsqrt.f32 %v64_v43 }
  0x35   :  { %v223_v45 = vpop.eup %222 }
  0x36   :  { %v225_v46 = vpop.eup %224  ;;  %v67_v48 = vmul.f32 64.0, %v223_v45 }
  0x37   :  { %v68_v49 = vmul.f32 64.0, %v225_v46 }
  0x96   :  { %v160_v51 = vpop.permute.xlu0 %159 }
  0x97   :  { %vm161_vm1 = vcmp.eq.s32.totalorder %v156_v47, %v160_v51  ;;  %vm162_vm2 = vcmp.eq.s32.totalorder %v157_v50, %v160_v51 }
  0xf1   :  { %v140_v52 = vpop.f32.mrb[0].mxu0 }
  0xf2   :  { %v145_v53 = vmul.f32 %v140_v52, %v67_v48  ;;  %v142_v54 = vpop.f32.mrb[1].mxu0 }
  0xf3   :  { %v146_v55 = vmul.f32 %v142_v54, %v68_v49 }
  0xf4   :  { %v205_v56 = vclamps-f32 %v145_v53, 63.9936 }
  0xf5   :  { %v206_v57 = vclamps-f32 %v146_v55, 63.9936 }
  0xf6   :  { %v163_v58 = vsel %vm161_vm1, %v205_v56, 0.0 }
  0xf7   :  { %v164_v59 = vsel %vm162_vm2, %v206_v57, 0.0 }
  0xf8   :  { %v165_v60 = vadd.f32 %v164_v59, %v163_v58 }
  0xfa   :  { %166 = vadd.xlane.f32.xlu0 %v165_v60 }
 0x187   :  { %v167_v61 = vpop.xlane.xlu0 %166 }
 0x188   :  { %v168_v62 = vmul.f32 0.015625, %v167_v61 }
 0x18a   :  { %v169_v63 = vmul.f32 %v168_v62, %v168_v62  ;;  %v179_v7 = vmul.f32 0.87758255, %v168_v62  ;;  %vm183_vm5 = vcmp.lt.f32.partialorder %v168_v62, -0.8775346 }
 0x18c   :  { %v170_v0 = vsub.f32 1.0, %v169_v63 }
 0x18e   :  { %v171_v1 = vmax.f32 %v170_v0, 0.0 }
 0x190   :  { %226 = vrsqrt.f32 %v171_v1  ;;  %vm174_vm3 = vcmp.eq.f32.partialorder %v171_v1, inf  ;;  %v177_v4 = vand.u32 2147483648, %v171_v1  ;;  %vm176_vm4 = vcmp.eq.f32.partialorder %v171_v1, 0.0 }
 0x19a   :  { %v227_v2 = vpop.eup %226 }
 0x19b   :  { %v173_v3 = vmul.f32 %v227_v2, %v171_v1 }
 0x19d   :  { %v175_v5 = vsel %vm174_vm3, %v171_v1, %v173_v3 }
 0x19e   :  { %v178_v6 = vsel %vm176_vm4, %v177_v4, %v175_v5 }
 0x19f   :  { %v180_v8 = vmul.f32 0.47942555, %v178_v6 }
 0x1a1   :  { %v181_v9 = vsub.f32 %v179_v7, %v180_v8 }
 0x1a3   :  { %v182_v10 = vmul.f32 64.0, %v181_v9 }
 0x1a5   :  { %v184_v11 = vsel %vm183_vm5, -64.0, %v182_v10 }
 0x1a6   :  { %v185_v12 = vsel %vm161_vm1, %v184_v11, %v205_v56  ;;  %v186_v13 = vsel %vm162_vm2, %v184_v11, %v206_v57 }
 0x1a7   :  { %187 = vst [vmem:[#allocation5] sm:$0xff] %v185_v12  ;;  %188 = vst [vmem:[#allocation5 + $0x8] sm:$0xff] %v186_v13 }
 0x1a8   :  { %261 = shalt.err (!%p258_p12)
}
 0x1a9   :  { %s262_s5 = scalar_lea.hbm %s339_s3, 256 }
 0x1aa   :  { %p263_p13 = scmp.ne.s32.totalorder %s339_s3, %s262_s5  ;;  %p266_p0 = scmp.lt.u32.totalorder %s262_s5, %s339_s3 }
 0x1ac   :  { %p268_p1 = pnand %p266_p0, %p263_p13 }
 0x1ae   :  { %271 = shalt.err (!%p268_p1)
}
 0x1af   :  { %198 = dma.vmem_to_hbm [thread:$0]  %s196_s2, 256, %s339_s3, [#allocation4]  }
 0x1b0   :  { %274 = dma.done.wait [#allocation4], 256  }
 0x1b1   :  { %275 = vsyncadd [#allocation4], 4294967040 }
 0x1b2   :  { %202 = vsyncpa [#allocation3], 1 }
 0x1b3   :  { %203 = vsyncpa [#allocation4], 1 }

</bundles_post_ra>
